<compile_context>
chip_gen: v7x
topology: tpu7x:2x2x1
jax: 0.10.0
libtpu: 0.0.40
codegen_flags: <defaults>
</compile_context>

<pallas_src>
import jax
import jax.numpy as jnp
from jax import lax
from jax.experimental import pallas as pl
from jax.experimental.pallas import tpu as pltpu


# Safe on v5e/v6e (128 MiB physical, raises the 16/32 MiB scoped defaults) and well under
# v7x's 64 MiB physical budget.  Re-derive together with the row-tiling TODO above.
_COMPILER_PARAMS = pltpu.CompilerParams(
    dimension_semantics=("parallel",),
    vmem_limit_bytes=32 * 1024 * 1024,
)


# ---------------------------------------------------------------------------
# Weight re-layout: torch OIHW -> 3 block-banded bf16 matrices (one per vertical tap).
#   B[ky, wi*I + i, wo*O + o] = w[o, i, ky, wi - wo + 1]   (zero when |wi - wo| > 1)
# For a row-packed activation row x[y, wi*I + i], x[y] @ B[ky] is the horizontal part of
# the 3x3 conv for vertical tap ky, packed as [wo*O + o]; the band implies the same zero
# padding along W, so no spatial pre-padding of the data is ever needed.
# ---------------------------------------------------------------------------
def _banded_weights(w_oihw, width):
    O, I, KH, KW = w_oihw.shape
    assert (KH, KW) == (3, 3)
    t = jnp.transpose(w_oihw, (2, 3, 1, 0))                   # (ky, kx, I, O)
    wi = jnp.arange(width)[:, None]
    wo = jnp.arange(width)[None, :]
    kx = wi - wo + 1                                          # (W, W)
    valid = (kx >= 0) & (kx < KW)
    b = t[:, jnp.clip(kx, 0, KW - 1), :, :]                   # (ky, wi, wo, I, O)
    b = jnp.where(valid[None, :, :, None, None], b, 0.0)
    b = jnp.transpose(b, (0, 1, 3, 2, 4))                     # (ky, wi, I, wo, O)
    return b.reshape(KH, width * I, width * O).astype(jnp.bfloat16)


# ---------------------------------------------------------------------------
# In-kernel helpers
# ---------------------------------------------------------------------------
def _conv_banded(a_bf16, b_ref, H, WO):
    """3x3 same-padding conv of a row-packed (H, W*Cin) bf16 tile -> (H, W*Cout) f32.

    Three full-K MXU dots (one per vertical tap); vertical taps / vertical zero padding
    are zero-filled row shifts of the f32 partial products (cheap f32 sublane work)."""
    p0 = jnp.dot(a_bf16, b_ref[0], preferred_element_type=jnp.float32)
    p1 = jnp.dot(a_bf16, b_ref[1], preferred_element_type=jnp.float32)
    p2 = jnp.dot(a_bf16, b_ref[2], preferred_element_type=jnp.float32)
    zrow = jnp.zeros((1, WO), jnp.float32)
    return (p1
            + jnp.concatenate([zrow, p0[:H - 1]], axis=0)     # input row y-1
            + jnp.concatenate([p2[1:], zrow], axis=0))        # input row y+1


def _stats_rows(acc):
    # Per-sample row-reduced (sum, sumsq) from the f32 accumulator; the remaining tiny
    # (n, w) -> channel reduction finishes in XLA.
    return jnp.concatenate(
        [jnp.sum(acc, axis=0, keepdims=True),
         jnp.sum(acc * acc, axis=0, keepdims=True)], axis=0)


# ---------------------------------------------------------------------------
# Kernel 1: conv1 on the bf16 row-packed input + per-sample BN partials
# ---------------------------------------------------------------------------
def conv1_stats(x_packed, bmat, H, W, Cout):
    N, _, WI = x_packed.shape
    WO = W * Cout

    def kernel(x_ref, b_ref, y_ref, st_ref):
        acc = _conv_banded(x_ref[0], b_ref, H, WO)            # bf16 ref straight to MXU
        y_ref[0] = acc.astype(jnp.bfloat16)                   # bf16 intermediate
        st_ref[0] = _stats_rows(acc)                          # f32 partials

    return pl.pallas_call(
        kernel,
        out_shape=(jax.ShapeDtypeStruct((N, H, WO), jnp.bfloat16),
                   jax.ShapeDtypeStruct((N, 2, WO), jnp.float32)),
        grid=(N,),
        in_specs=[pl.BlockSpec((1, H, WI), lambda n: (n, 0, 0)),
                  pl.BlockSpec((3, WI, WO), lambda n: (0, 0, 0))],   # VMEM-resident
        out_specs=(pl.BlockSpec((1, H, WO), lambda n: (n, 0, 0)),
                   pl.BlockSpec((1, 2, WO), lambda n: (n, 0, 0))),
        compiler_params=_COMPILER_PARAMS,
    )(x_packed, bmat)


# ---------------------------------------------------------------------------
# Kernel 2: BN1 (global batch stats) + LeakyReLU + conv2 + per-sample BN partials
# ---------------------------------------------------------------------------
def bn_act_conv_stats(y_prev, scale_p, shift_p, bmat, H, W, Cout):
    N, _, WI = y_prev.shape
    WO = W * Cout

    def kernel(y_ref, sc_ref, sh_ref, b_ref, o_ref, st_ref):
        a = y_ref[0].astype(jnp.float32) * sc_ref[...] + sh_ref[...]   # BN (f32 VPU)
        a = jnp.where(a >= 0.0, a, 0.2 * a)                            # LeakyReLU(0.2)
        acc = _conv_banded(a.astype(jnp.bfloat16), b_ref, H, WO)       # single downcast
        o_ref[0] = acc.astype(jnp.bfloat16)
        st_ref[0] = _stats_rows(acc)

    return pl.pallas_call(
        kernel,
        out_shape=(jax.ShapeDtypeStruct((N, H, WO), jnp.bfloat16),
                   jax.ShapeDtypeStruct((N, 2, WO), jnp.float32)),
        grid=(N,),
        in_specs=[pl.BlockSpec((1, H, WI), lambda n: (n, 0, 0)),
                  pl.BlockSpec((1, WI), lambda n: (0, 0)),             # packed BN scale
                  pl.BlockSpec((1, WI), lambda n: (0, 0)),             # packed BN shift
                  pl.BlockSpec((3, WI, WO), lambda n: (0, 0, 0))],     # VMEM-resident
        out_specs=(pl.BlockSpec((1, H, WO), lambda n: (n, 0, 0)),
                   pl.BlockSpec((1, 2, WO), lambda n: (n, 0, 0))),
        compiler_params=_COMPILER_PARAMS,
    )(y_prev, scale_p, shift_p, bmat)


# ---------------------------------------------------------------------------
# Kernel 3: BN2 + LeakyReLU + fused 2x2/stride-2 maxpool (only the pooled tile is written)
# ---------------------------------------------------------------------------
def bn_act_pool(y, scale_p, shift_p, H, W, C):
    N = y.shape[0]
    WC = W * C
    H2, W2 = H // 2, W // 2

    def kernel(y_ref, sc_ref, sh_ref, o_ref):
        a = y_ref[0].astype(jnp.float32) * sc_ref[...] + sh_ref[...]
        a = jnp.where(a >= 0.0, a, 0.2 * a)
        # rows: pair-max after a cheap (H, WC) -> (H2, 2, WC) second-minor split
        r = a.reshape(H2, 2, WC)
        rm = jnp.maximum(r[:, 0, :], r[:, 1, :])                       # (H2, WC)
        # cols: pair-max of adjacent C-wide lane blocks, compacted by one lane concat
        cols = [jnp.maximum(rm[:, (2 * j) * C:(2 * j + 1) * C],
                            rm[:, (2 * j + 1) * C:(2 * j + 2) * C])
                for j in range(W2)]
        o_ref[0] = jnp.concatenate(cols, axis=1)                       # (H2, W2*C)

    return pl.pallas_call(
        kernel,
        out_shape=jax.ShapeDtypeStruct((N, H2, W2 * C), jnp.float32),
        grid=(N,),
        in_specs=[pl.BlockSpec((1, H, WC), lambda n: (n, 0, 0)),
                  pl.BlockSpec((1, WC), lambda n: (0, 0)),
                  pl.BlockSpec((1, WC), lambda n: (0, 0))],
        out_specs=pl.BlockSpec((1, H2, W2 * C), lambda n: (n, 0, 0)),
        compiler_params=_COMPILER_PARAMS,
    )(y, scale_p, shift_p)


# ---------------------------------------------------------------------------
# Forward pass (external interface NCHW like PyTorch)
# ---------------------------------------------------------------------------
def contracting_block_forward(x_nchw, params):
    # Conv biases b1/b2 are intentionally unused: a per-channel constant added before
    # training-mode BatchNorm is exactly cancelled by the mean subtraction.
    w1, w2 = params["w1"], params["w2"]
    gamma = params["gamma"].astype(jnp.float32)
    beta = params["beta"].astype(jnp.float32)
    N, Cin, H, W = x_nchw.shape
    C2 = w1.shape[0]
    assert H % 2 == 0 and W % 2 == 0, "2x2 stride-2 maxpool needs even H and W"
    assert w2.shape[:2] == (C2, C2)
    count = N * H * W
    eps = 1e-5

    # NCHW -> row-packed NHWC: (N, H, W*C), channels minor inside each image row.
    x_p = (jnp.transpose(x_nchw, (0, 2, 3, 1))
           .reshape(N, H, W * Cin).astype(jnp.bfloat16))

    b1 = _banded_weights(w1, W)                       # (3, W*Cin, W*C2) bf16
    b2 = _banded_weights(w2, W)                       # (3, W*C2,  W*C2) bf16

    def bn_coeffs(st):
        # st: (N, 2, W*C2) per-sample (sum, sumsq); tiny XLA reduction -> global stats,
        # then the per-channel affine is tiled back to lane width for the kernels.
        s = st.reshape(N, 2, W, C2).sum(axis=(0, 2))  # (2, C2) global sums
        mean = s[0] / count
        # TODO(synk): E[x^2]-E[x]^2 cancels badly at production sizes; use a shifted /
        # two-pass variance there.
        var = s[1] / count - mean * mean
        scale = gamma * lax.rsqrt(var + eps)
        shift = beta - mean * scale
        return jnp.tile(scale, W)[None, :], jnp.tile(shift, W)[None, :]

    # conv1 + batch stats
    y1, st1 = conv1_stats(x_p, b1, H, W, C2)
    sc1, sh1 = bn_coeffs(st1)
    # BN1 + LeakyReLU + conv2 + batch stats (no HBM pad pass, no f32 intermediates)
    y2, st2 = bn_act_conv_stats(y1, sc1, sh1, b2, H, W, C2)
    sc2, sh2 = bn_coeffs(st2)
    # BN2 + LeakyReLU + 2x2 maxpool
    pooled = bn_act_pool(y2, sc2, sh2, H, W, C2)      # (N, H/2, (W/2)*C2) f32
    out = pooled.reshape(N, H // 2, W // 2, C2)
    return jnp.transpose(out, (0, 3, 1, 2))           # NHWC -> NCHW


# ---------------------------------------------------------------------------
# Pure-JAX reference (mirrors the PyTorch forward in training mode, incl. conv bias)
# ---------------------------------------------------------------------------
def reference_forward(x, params):
    w1, b1 = params["w1"], params["b1"]
    w2, b2 = params["w2"], params["b2"]
    gamma, beta = params["gamma"], params["beta"]

    def conv(h, w, b):
        y = lax.conv_general_dilated(h, w, (1, 1), ((1, 1), (1, 1)),
                                     dimension_numbers=("NCHW", "OIHW", "NCHW"))
        return y + b[None, :, None, None]

    def bn(h):
        mean = h.mean(axis=(0, 2, 3), keepdims=True)
        var = ((h - mean) ** 2).mean(axis=(0, 2, 3), keepdims=True)
        return ((h - mean) / jnp.sqrt(var + 1e-5)
                * gamma[None, :, None, None] + beta[None, :, None, None])

    def lrelu(h):
        return jnp.where(h >= 0, h, 0.2 * h)

    y = lrelu(bn(conv(x, w1, b1)))
    y = lrelu(bn(conv(y, w2, b2)))
    N, C, H, W = y.shape
    return y.reshape(N, C, H // 2, 2, W // 2, 2).max(axis=(3, 5))


# ---------------------------------------------------------------------------
if __name__ == "__main__":
    key = jax.random.PRNGKey(0)
    N, Cin, H, W = 2, 4, 16, 16
    C2 = Cin * 2

    k_x, k_w1, k_b1, k_w2, k_b2 = jax.random.split(key, 5)
    x = jax.random.normal(k_x, (N, Cin, H, W), jnp.float32)
    params = dict(
        w1=jax.random.normal(k_w1, (C2, Cin, 3, 3), jnp.float32) * 0.1,
        b1=jax.random.normal(k_b1, (C2,), jnp.float32) * 0.1,
        w2=jax.random.normal(k_w2, (C2, C2, 3, 3), jnp.float32) * 0.1,
        b2=jax.random.normal(k_b2, (C2,), jnp.float32) * 0.1,
        gamma=jnp.ones((C2,), jnp.float32),   # BatchNorm2d default weight
        beta=jnp.zeros((C2,), jnp.float32),   # BatchNorm2d default bias
    )

    fwd = jax.jit(contracting_block_forward)
    out = jax.block_until_ready(fwd(x, params))
    ref = jax.block_until_ready(reference_forward(x, params))

    assert out.shape == (N, C2, H // 2, W // 2), out.shape
    err = float(jnp.max(jnp.abs(out - ref)))
    # bf16 MXU operands and bf16-stored intermediates through two conv + BN stages
    # => looser tolerance than a pure-f32 path.
    assert jnp.allclose(out, ref, rtol=6e-2, atol=6e-2), f"max abs err {err}"
    print("KERNEL_OK")
</pallas_src>

<mosaic_0001>
module attributes {stable_mosaic.version = 11 : i64} {
  func.func @kernel(%arg0: i32, %arg1: memref<1x16x64xbf16, #tpu.memory_space<vmem>>, %arg2: memref<3x64x128xbf16, #tpu.memory_space<vmem>>, %arg3: memref<1x16x128xbf16, #tpu.memory_space<vmem>>, %arg4: memref<1x2x128xf32, #tpu.memory_space<vmem>>) attributes {dimension_semantics = [#tpu.dimension_semantics<parallel>], iteration_bounds = array<i64: 2>, scalar_prefetch = 0 : i64, scratch_operands = 0 : i64, tpu.core_type = #tpu.core_type<tc>, window_params = [{transform_indices = @transform_0, window_bounds = array<i64: 1, 16, 64>}, {pipeline_mode = #tpu.pipeline_mode<synchronous>, transform_indices = @transform_1, window_bounds = array<i64: 3, 64, 128>}, {transform_indices = @transform_2, window_bounds = array<i64: 1, 16, 128>}, {transform_indices = @transform_3, window_bounds = array<i64: 1, 2, 128>}]} {
    %c0 = arith.constant 0 : index
    %c0_0 = arith.constant 0 : index
    %c0_1 = arith.constant 0 : index
    %0 = vector.load %arg1[%c0, %c0_0, %c0_1] : memref<1x16x64xbf16, #tpu.memory_space<vmem>>, vector<1x16x64xbf16>
    %1 = vector.shape_cast %0 : vector<1x16x64xbf16> to vector<16x64xbf16>
    %c0_2 = arith.constant 0 : index
    %c0_3 = arith.constant 0 : index
    %c0_4 = arith.constant 0 : index
    %2 = vector.load %arg2[%c0_2, %c0_3, %c0_4] : memref<3x64x128xbf16, #tpu.memory_space<vmem>>, vector<1x64x128xbf16>
    %3 = vector.shape_cast %2 : vector<1x64x128xbf16> to vector<64x128xbf16>
    %cst = arith.constant dense<0.000000e+00> : vector<16x128xf32>
    %4 = tpu.matmul %1, %3, %cst {dimension_numbers = #tpu.dot_dimension_numbers<[1], [0], [0], [1], [0, 0, 1, 1], [], []>} : vector<16x64xbf16>, vector<64x128xbf16>, vector<16x128xf32> -> vector<16x128xf32>
    %c1 = arith.constant 1 : index
    %c0_5 = arith.constant 0 : index
    %c0_6 = arith.constant 0 : index
    %5 = vector.load %arg2[%c1, %c0_5, %c0_6] : memref<3x64x128xbf16, #tpu.memory_space<vmem>>, vector<1x64x128xbf16>
    %6 = vector.shape_cast %5 : vector<1x64x128xbf16> to vector<64x128xbf16>
    %cst_7 = arith.constant dense<0.000000e+00> : vector<16x128xf32>
    %7 = tpu.matmul %1, %6, %cst_7 {dimension_numbers = #tpu.dot_dimension_numbers<[1], [0], [0], [1], [0, 0, 1, 1], [], []>} : vector<16x64xbf16>, vector<64x128xbf16>, vector<16x128xf32> -> vector<16x128xf32>
    %c2 = arith.constant 2 : index
    %c0_8 = arith.constant 0 : index
    %c0_9 = arith.constant 0 : index
    %8 = vector.load %arg2[%c2, %c0_8, %c0_9] : memref<3x64x128xbf16, #tpu.memory_space<vmem>>, vector<1x64x128xbf16>
    %9 = vector.shape_cast %8 : vector<1x64x128xbf16> to vector<64x128xbf16>
    %cst_10 = arith.constant dense<0.000000e+00> : vector<16x128xf32>
    %10 = tpu.matmul %1, %9, %cst_10 {dimension_numbers = #tpu.dot_dimension_numbers<[1], [0], [0], [1], [0, 0, 1, 1], [], []>} : vector<16x64xbf16>, vector<64x128xbf16>, vector<16x128xf32> -> vector<16x128xf32>
    %cst_11 = arith.constant 0.000000e+00 : f32
    %11 = vector.broadcast %cst_11 : f32 to vector<1x128xf32>
    %12 = vector.extract_strided_slice %4 {offsets = [0, 0], sizes = [15, 128], strides = [1, 1]} : vector<16x128xf32> to vector<15x128xf32>
    %13 = tpu.concatenate %11, %12 in 0 : vector<1x128xf32>, vector<15x128xf32> -> vector<16x128xf32>
    %14 = arith.addf %7, %13 : vector<16x128xf32>
    %15 = vector.extract_strided_slice %10 {offsets = [1, 0], sizes = [15, 128], strides = [1, 1]} : vector<16x128xf32> to vector<15x128xf32>
    %16 = tpu.concatenate %15, %11 in 0 : vector<15x128xf32>, vector<1x128xf32> -> vector<16x128xf32>
    %17 = arith.addf %14, %16 : vector<16x128xf32>
    %18 = arith.truncf %17 : vector<16x128xf32> to vector<16x128xbf16>
    %c0_12 = arith.constant 0 : index
    %c0_13 = arith.constant 0 : index
    %c0_14 = arith.constant 0 : index
    %19 = vector.load %arg3[%c0_12, %c0_13, %c0_14] : memref<1x16x128xbf16, #tpu.memory_space<vmem>>, vector<1x16x128xbf16>
    %20 = vector.shape_cast %19 : vector<1x16x128xbf16> to vector<16x128xbf16>
    %21 = vector.shape_cast %18 : vector<16x128xbf16> to vector<1x16x128xbf16>
    tpu.vector_store %arg3[%c0_12, %c0_13, %c0_14], %21 {strides = array<i32>} : memref<1x16x128xbf16, #tpu.memory_space<vmem>>, vector<1x16x128xbf16>,
    %cst_15 = arith.constant dense<0.000000e+00> : vector<128xf32>
    %22 = vector.multi_reduction <add>, %17, %cst_15 [0] : vector<16x128xf32> to vector<128xf32>
    %23 = vector.shape_cast %22 : vector<128xf32> to vector<1x128xf32>
    %24 = arith.mulf %17, %17 : vector<16x128xf32>
    %cst_16 = arith.constant dense<0.000000e+00> : vector<128xf32>
    %25 = vector.multi_reduction <add>, %24, %cst_16 [0] : vector<16x128xf32> to vector<128xf32>
    %26 = vector.shape_cast %25 : vector<128xf32> to vector<1x128xf32>
    %27 = tpu.concatenate %23, %26 in 0 : vector<1x128xf32>, vector<1x128xf32> -> vector<2x128xf32>
    %c0_17 = arith.constant 0 : index
    %c0_18 = arith.constant 0 : index
    %c0_19 = arith.constant 0 : index
    %28 = vector.load %arg4[%c0_17, %c0_18, %c0_19] : memref<1x2x128xf32, #tpu.memory_space<vmem>>, vector<1x2x128xf32>
    %29 = vector.shape_cast %28 : vector<1x2x128xf32> to vector<2x128xf32>
    %30 = vector.shape_cast %27 : vector<2x128xf32> to vector<1x2x128xf32>
    tpu.vector_store %arg4[%c0_17, %c0_18, %c0_19], %30 {strides = array<i32>} : memref<1x2x128xf32, #tpu.memory_space<vmem>>, vector<1x2x128xf32>,
    return
  }
  func.func @transform_0(%arg0: i32) -> (i32, i32, i32) {
    %c0_i32 = arith.constant 0 : i32
    %c0_i32_0 = arith.constant 0 : i32
    %c0_i32_1 = arith.constant 0 : i32
    return %arg0, %c0_i32, %c0_i32_0 : i32, i32, i32
  }
  func.func @transform_1(%arg0: i32) -> (i32, i32, i32) {
    %c0_i32 = arith.constant 0 : i32
    %c0_i32_0 = arith.constant 0 : i32
    %c0_i32_1 = arith.constant 0 : i32
    %c0_i32_2 = arith.constant 0 : i32
    return %c0_i32, %c0_i32_0, %c0_i32_1 : i32, i32, i32
  }
  func.func @transform_2(%arg0: i32) -> (i32, i32, i32) {
    %c0_i32 = arith.constant 0 : i32
    %c0_i32_0 = arith.constant 0 : i32
    %c0_i32_1 = arith.constant 0 : i32
    return %arg0, %c0_i32, %c0_i32_0 : i32, i32, i32
  }
  func.func @transform_3(%arg0: i32) -> (i32, i32, i32) {
    %c0_i32 = arith.constant 0 : i32
    %c0_i32_0 = arith.constant 0 : i32
    %c0_i32_1 = arith.constant 0 : i32
    return %arg0, %c0_i32, %c0_i32_0 : i32, i32, i32
  }
}

module attributes {stable_mosaic.version = 11 : i64} {
  func.func @kernel(%arg0: i32, %arg1: memref<1x16x128xbf16, #tpu.memory_space<vmem>>, %arg2: memref<1x128xf32, #tpu.memory_space<vmem>>, %arg3: memref<1x128xf32, #tpu.memory_space<vmem>>, %arg4: memref<3x128x128xbf16, #tpu.memory_space<vmem>>, %arg5: memref<1x16x128xbf16, #tpu.memory_space<vmem>>, %arg6: memref<1x2x128xf32, #tpu.memory_space<vmem>>) attributes {dimension_semantics = [#tpu.dimension_semantics<parallel>], iteration_bounds = array<i64: 2>, scalar_prefetch = 0 : i64, scratch_operands = 0 : i64, tpu.core_type = #tpu.core_type<tc>, window_params = [{transform_indices = @transform_0, window_bounds = array<i64: 1, 16, 128>}, {pipeline_mode = #tpu.pipeline_mode<synchronous>, transform_indices = @transform_1, window_bounds = array<i64: 1, 128>}, {pipeline_mode = #tpu.pipeline_mode<synchronous>, transform_indices = @transform_2, window_bounds = array<i64: 1, 128>}, {pipeline_mode = #tpu.pipeline_mode<synchronous>, transform_indices = @transform_3, window_bounds = array<i64: 3, 128, 128>}, {transform_indices = @transform_4, window_bounds = array<i64: 1, 16, 128>}, {transform_indices = @transform_5, window_bounds = array<i64: 1, 2, 128>}]} {
    %c0 = arith.constant 0 : index
    %c0_0 = arith.constant 0 : index
    %c0_1 = arith.constant 0 : index
    %0 = vector.load %arg1[%c0, %c0_0, %c0_1] : memref<1x16x128xbf16, #tpu.memory_space<vmem>>, vector<1x16x128xbf16>
    %1 = vector.shape_cast %0 : vector<1x16x128xbf16> to vector<16x128xbf16>
    %2 = arith.extf %1 : vector<16x128xbf16> to vector<16x128xf32>
    %c0_2 = arith.constant 0 : index
    %c0_3 = arith.constant 0 : index
    %3 = vector.load %arg2[%c0_2, %c0_3] : memref<1x128xf32, #tpu.memory_space<vmem>>, vector<1x128xf32>
    %4 = vector.broadcast %3 : vector<1x128xf32> to vector<16x128xf32>
    %5 = arith.mulf %2, %4 : vector<16x128xf32>
    %c0_4 = arith.constant 0 : index
    %c0_5 = arith.constant 0 : index
    %6 = vector.load %arg3[%c0_4, %c0_5] : memref<1x128xf32, #tpu.memory_space<vmem>>, vector<1x128xf32>
    %7 = vector.broadcast %6 : vector<1x128xf32> to vector<16x128xf32>
    %8 = arith.addf %5, %7 : vector<16x128xf32>
    %cst = arith.constant 0.000000e+00 : f32
    %9 = vector.broadcast %cst : f32 to vector<16x128xf32>
    %10 = arith.cmpf oge, %8, %9 : vector<16x128xf32>
    %cst_6 = arith.constant 2.000000e-01 : f32
    %11 = vector.broadcast %cst_6 : f32 to vector<16x128xf32>
    %12 = arith.mulf %11, %8 : vector<16x128xf32>
    %13 = arith.select %10, %8, %12 : vector<16x128xi1>, vector<16x128xf32>
    %14 = arith.truncf %13 : vector<16x128xf32> to vector<16x128xbf16>
    %c0_7 = arith.constant 0 : index
    %c0_8 = arith.constant 0 : index
    %c0_9 = arith.constant 0 : index
    %15 = vector.load %arg4[%c0_7, %c0_8, %c0_9] : memref<3x128x128xbf16, #tpu.memory_space<vmem>>, vector<1x128x128xbf16>
    %16 = vector.shape_cast %15 : vector<1x128x128xbf16> to vector<128x128xbf16>
    %cst_10 = arith.constant dense<0.000000e+00> : vector<16x128xf32>
    %17 = tpu.matmul %14, %16, %cst_10 {dimension_numbers = #tpu.dot_dimension_numbers<[1], [0], [0], [1], [0, 0, 1, 1], [], []>} : vector<16x128xbf16>, vector<128x128xbf16>, vector<16x128xf32> -> vector<16x128xf32>
    %c1 = arith.constant 1 : index
    %c0_11 = arith.constant 0 : index
    %c0_12 = arith.constant 0 : index
    %18 = vector.load %arg4[%c1, %c0_11, %c0_12] : memref<3x128x128xbf16, #tpu.memory_space<vmem>>, vector<1x128x128xbf16>
    %19 = vector.shape_cast %18 : vector<1x128x128xbf16> to vector<128x128xbf16>
    %cst_13 = arith.constant dense<0.000000e+00> : vector<16x128xf32>
    %20 = tpu.matmul %14, %19, %cst_13 {dimension_numbers = #tpu.dot_dimension_numbers<[1], [0], [0], [1], [0, 0, 1, 1], [], []>} : vector<16x128xbf16>, vector<128x128xbf16>, vector<16x128xf32> -> vector<16x128xf32>
    %c2 = arith.constant 2 : index
    %c0_14 = arith.constant 0 : index
    %c0_15 = arith.constant 0 : index
    %21 = vector.load %arg4[%c2, %c0_14, %c0_15] : memref<3x128x128xbf16, #tpu.memory_space<vmem>>, vector<1x128x128xbf16>
    %22 = vector.shape_cast %21 : vector<1x128x128xbf16> to vector<128x128xbf16>
    %cst_16 = arith.constant dense<0.000000e+00> : vector<16x128xf32>
    %23 = tpu.matmul %14, %22, %cst_16 {dimension_numbers = #tpu.dot_dimension_numbers<[1], [0], [0], [1], [0, 0, 1, 1], [], []>} : vector<16x128xbf16>, vector<128x128xbf16>, vector<16x128xf32> -> vector<16x128xf32>
    %cst_17 = arith.constant 0.000000e+00 : f32
    %24 = vector.broadcast %cst_17 : f32 to vector<1x128xf32>
    %25 = vector.extract_strided_slice %17 {offsets = [0, 0], sizes = [15, 128], strides = [1, 1]} : vector<16x128xf32> to vector<15x128xf32>
    %26 = tpu.concatenate %24, %25 in 0 : vector<1x128xf32>, vector<15x128xf32> -> vector<16x128xf32>
    %27 = arith.addf %20, %26 : vector<16x128xf32>
    %28 = vector.extract_strided_slice %23 {offsets = [1, 0], sizes = [15, 128], strides = [1, 1]} : vector<16x128xf32> to vector<15x128xf32>
    %29 = tpu.concatenate %28, %24 in 0 : vector<15x128xf32>, vector<1x128xf32> -> vector<16x128xf32>
    %30 = arith.addf %27, %29 : vector<16x128xf32>
    %31 = arith.truncf %30 : vector<16x128xf32> to vector<16x128xbf16>
    %c0_18 = arith.constant 0 : index
    %c0_19 = arith.constant 0 : index
    %c0_20 = arith.constant 0 : index
    %32 = vector.load %arg5[%c0_18, %c0_19, %c0_20] : memref<1x16x128xbf16, #tpu.memory_space<vmem>>, vector<1x16x128xbf16>
    %33 = vector.shape_cast %32 : vector<1x16x128xbf16> to vector<16x128xbf16>
    %34 = vector.shape_cast %31 : vector<16x128xbf16> to vector<1x16x128xbf16>
    tpu.vector_store %arg5[%c0_18, %c0_19, %c0_20], %34 {strides = array<i32>} : memref<1x16x128xbf16, #tpu.memory_space<vmem>>, vector<1x16x128xbf16>,
    %cst_21 = arith.constant dense<0.000000e+00> : vector<128xf32>
    %35 = vector.multi_reduction <add>, %30, %cst_21 [0] : vector<16x128xf32> to vector<128xf32>
    %36 = vector.shape_cast %35 : vector<128xf32> to vector<1x128xf32>
    %37 = arith.mulf %30, %30 : vector<16x128xf32>
    %cst_22 = arith.constant dense<0.000000e+00> : vector<128xf32>
    %38 = vector.multi_reduction <add>, %37, %cst_22 [0] : vector<16x128xf32> to vector<128xf32>
    %39 = vector.shape_cast %38 : vector<128xf32> to vector<1x128xf32>
    %40 = tpu.concatenate %36, %39 in 0 : vector<1x128xf32>, vector<1x128xf32> -> vector<2x128xf32>
    %c0_23 = arith.constant 0 : index
    %c0_24 = arith.constant 0 : index
    %c0_25 = arith.constant 0 : index
    %41 = vector.load %arg6[%c0_23, %c0_24, %c0_25] : memref<1x2x128xf32, #tpu.memory_space<vmem>>, vector<1x2x128xf32>
    %42 = vector.shape_cast %41 : vector<1x2x128xf32> to vector<2x128xf32>
    %43 = vector.shape_cast %40 : vector<2x128xf32> to vector<1x2x128xf32>
    tpu.vector_store %arg6[%c0_23, %c0_24, %c0_25], %43 {strides = array<i32>} : memref<1x2x128xf32, #tpu.memory_space<vmem>>, vector<1x2x128xf32>,
    return
  }
  func.func @transform_0(%arg0: i32) -> (i32, i32, i32) {
    %c0_i32 = arith.constant 0 : i32
    %c0_i32_0 = arith.constant 0 : i32
    %c0_i32_1 = arith.constant 0 : i32
    return %arg0, %c0_i32, %c0_i32_0 : i32, i32, i32
  }
  func.func @transform_1(%arg0: i32) -> (i32, i32) {
    %c0_i32 = arith.constant 0 : i32
    %c0_i32_0 = arith.constant 0 : i32
    %c0_i32_1 = arith.constant 0 : i32
    return %c0_i32, %c0_i32_0 : i32, i32
  }
  func.func @transform_2(%arg0: i32) -> (i32, i32) {
    %c0_i32 = arith.constant 0 : i32
    %c0_i32_0 = arith.constant 0 : i32
    %c0_i32_1 = arith.constant 0 : i32
    return %c0_i32, %c0_i32_0 : i32, i32
  }
  func.func @transform_3(%arg0: i32) -> (i32, i32, i32) {
    %c0_i32 = arith.constant 0 : i32
    %c0_i32_0 = arith.constant 0 : i32
    %c0_i32_1 = arith.constant 0 : i32
    %c0_i32_2 = arith.constant 0 : i32
    return %c0_i32, %c0_i32_0, %c0_i32_1 : i32, i32, i32
  }
  func.func @transform_4(%arg0: i32) -> (i32, i32, i32) {
    %c0_i32 = arith.constant 0 : i32
    %c0_i32_0 = arith.constant 0 : i32
    %c0_i32_1 = arith.constant 0 : i32
    return %arg0, %c0_i32, %c0_i32_0 : i32, i32, i32
  }
  func.func @transform_5(%arg0: i32) -> (i32, i32, i32) {
    %c0_i32 = arith.constant 0 : i32
    %c0_i32_0 = arith.constant 0 : i32
    %c0_i32_1 = arith.constant 0 : i32
    return %arg0, %c0_i32, %c0_i32_0 : i32, i32, i32
  }
}

module attributes {stable_mosaic.version = 11 : i64} {
  func.func @kernel(%arg0: i32, %arg1: memref<1x16x128xbf16, #tpu.memory_space<vmem>>, %arg2: memref<1x128xf32, #tpu.memory_space<vmem>>, %arg3: memref<1x128xf32, #tpu.memory_space<vmem>>, %arg4: memref<1x8x64xf32, #tpu.memory_space<vmem>>) attributes {dimension_semantics = [#tpu.dimension_semantics<parallel>], iteration_bounds = array<i64: 2>, scalar_prefetch = 0 : i64, scratch_operands = 0 : i64, tpu.core_type = #tpu.core_type<tc>, window_params = [{transform_indices = @transform_0, window_bounds = array<i64: 1, 16, 128>}, {pipeline_mode = #tpu.pipeline_mode<synchronous>, transform_indices = @transform_1, window_bounds = array<i64: 1, 128>}, {pipeline_mode = #tpu.pipeline_mode<synchronous>, transform_indices = @transform_2, window_bounds = array<i64: 1, 128>}, {transform_indices = @transform_3, window_bounds = array<i64: 1, 8, 64>}]} {
    %c0 = arith.constant 0 : index
    %c0_0 = arith.constant 0 : index
    %c0_1 = arith.constant 0 : index
    %0 = vector.load %arg1[%c0, %c0_0, %c0_1] : memref<1x16x128xbf16, #tpu.memory_space<vmem>>, vector<1x16x128xbf16>
    %1 = vector.shape_cast %0 : vector<1x16x128xbf16> to vector<16x128xbf16>
    %2 = arith.extf %1 : vector<16x128xbf16> to vector<16x128xf32>
    %c0_2 = arith.constant 0 : index
    %c0_3 = arith.constant 0 : index
    %3 = vector.load %arg2[%c0_2, %c0_3] : memref<1x128xf32, #tpu.memory_space<vmem>>, vector<1x128xf32>
    %4 = vector.broadcast %3 : vector<1x128xf32> to vector<16x128xf32>
    %5 = arith.mulf %2, %4 : vector<16x128xf32>
    %c0_4 = arith.constant 0 : index
    %c0_5 = arith.constant 0 : index
    %6 = vector.load %arg3[%c0_4, %c0_5] : memref<1x128xf32, #tpu.memory_space<vmem>>, vector<1x128xf32>
    %7 = vector.broadcast %6 : vector<1x128xf32> to vector<16x128xf32>
    %8 = arith.addf %5, %7 : vector<16x128xf32>
    %cst = arith.constant 0.000000e+00 : f32
    %9 = vector.broadcast %cst : f32 to vector<16x128xf32>
    %10 = arith.cmpf oge, %8, %9 : vector<16x128xf32>
    %cst_6 = arith.constant 2.000000e-01 : f32
    %11 = vector.broadcast %cst_6 : f32 to vector<16x128xf32>
    %12 = arith.mulf %11, %8 : vector<16x128xf32>
    %13 = arith.select %10, %8, %12 : vector<16x128xi1>, vector<16x128xf32>
    %14 = vector.shape_cast %13 : vector<16x128xf32> to vector<8x2x128xf32>
    %15 = vector.extract_strided_slice %14 {offsets = [0, 0, 0], sizes = [8, 1, 128], strides = [1, 1, 1]} : vector<8x2x128xf32> to vector<8x1x128xf32>
    %16 = vector.shape_cast %15 : vector<8x1x128xf32> to vector<8x128xf32>
    %17 = vector.extract_strided_slice %14 {offsets = [0, 1, 0], sizes = [8, 1, 128], strides = [1, 1, 1]} : vector<8x2x128xf32> to vector<8x1x128xf32>
    %18 = vector.shape_cast %17 : vector<8x1x128xf32> to vector<8x128xf32>
    %19 = arith.maximumf %16, %18 : vector<8x128xf32>
    %20 = vector.extract_strided_slice %19 {offsets = [0, 0], sizes = [8, 8], strides = [1, 1]} : vector<8x128xf32> to vector<8x8xf32>
    %21 = vector.extract_strided_slice %19 {offsets = [0, 8], sizes = [8, 8], strides = [1, 1]} : vector<8x128xf32> to vector<8x8xf32>
    %22 = arith.maximumf %20, %21 : vector<8x8xf32>
    %23 = vector.extract_strided_slice %19 {offsets = [0, 16], sizes = [8, 8], strides = [1, 1]} : vector<8x128xf32> to vector<8x8xf32>
    %24 = vector.extract_strided_slice %19 {offsets = [0, 24], sizes = [8, 8], strides = [1, 1]} : vector<8x128xf32> to vector<8x8xf32>
    %25 = arith.maximumf %23, %24 : vector<8x8xf32>
    %26 = vector.extract_strided_slice %19 {offsets = [0, 32], sizes = [8, 8], strides = [1, 1]} : vector<8x128xf32> to vector<8x8xf32>
    %27 = vector.extract_strided_slice %19 {offsets = [0, 40], sizes = [8, 8], strides = [1, 1]} : vector<8x128xf32> to vector<8x8xf32>
    %28 = arith.maximumf %26, %27 : vector<8x8xf32>
    %29 = vector.extract_strided_slice %19 {offsets = [0, 48], sizes = [8, 8], strides = [1, 1]} : vector<8x128xf32> to vector<8x8xf32>
    %30 = vector.extract_strided_slice %19 {offsets = [0, 56], sizes = [8, 8], strides = [1, 1]} : vector<8x128xf32> to vector<8x8xf32>
    %31 = arith.maximumf %29, %30 : vector<8x8xf32>
    %32 = vector.extract_strided_slice %19 {offsets = [0, 64], sizes = [8, 8], strides = [1, 1]} : vector<8x128xf32> to vector<8x8xf32>
    %33 = vector.extract_strided_slice %19 {offsets = [0, 72], sizes = [8, 8], strides = [1, 1]} : vector<8x128xf32> to vector<8x8xf32>
    %34 = arith.maximumf %32, %33 : vector<8x8xf32>
    %35 = vector.extract_strided_slice %19 {offsets = [0, 80], sizes = [8, 8], strides = [1, 1]} : vector<8x128xf32> to vector<8x8xf32>
    %36 = vector.extract_strided_slice %19 {offsets = [0, 88], sizes = [8, 8], strides = [1, 1]} : vector<8x128xf32> to vector<8x8xf32>
    %37 = arith.maximumf %35, %36 : vector<8x8xf32>
    %38 = vector.extract_strided_slice %19 {offsets = [0, 96], sizes = [8, 8], strides = [1, 1]} : vector<8x128xf32> to vector<8x8xf32>
    %39 = vector.extract_strided_slice %19 {offsets = [0, 104], sizes = [8, 8], strides = [1, 1]} : vector<8x128xf32> to vector<8x8xf32>
    %40 = arith.maximumf %38, %39 : vector<8x8xf32>
    %41 = vector.extract_strided_slice %19 {offsets = [0, 112], sizes = [8, 8], strides = [1, 1]} : vector<8x128xf32> to vector<8x8xf32>
    %42 = vector.extract_strided_slice %19 {offsets = [0, 120], sizes = [8, 8], strides = [1, 1]} : vector<8x128xf32> to vector<8x8xf32>
    %43 = arith.maximumf %41, %42 : vector<8x8xf32>
    %44 = tpu.concatenate %22, %25, %28, %31, %34, %37, %40, %43 in 1 : vector<8x8xf32>, vector<8x8xf32>, vector<8x8xf32>, vector<8x8xf32>, vector<8x8xf32>, vector<8x8xf32>, vector<8x8xf32>, vector<8x8xf32> -> vector<8x64xf32>
    %c0_7 = arith.constant 0 : index
    %c0_8 = arith.constant 0 : index
    %c0_9 = arith.constant 0 : index
    %45 = vector.load %arg4[%c0_7, %c0_8, %c0_9] : memref<1x8x64xf32, #tpu.memory_space<vmem>>, vector<1x8x64xf32>
    %46 = vector.shape_cast %45 : vector<1x8x64xf32> to vector<8x64xf32>
    %47 = vector.shape_cast %44 : vector<8x64xf32> to vector<1x8x64xf32>
    tpu.vector_store %arg4[%c0_7, %c0_8, %c0_9], %47 {strides = array<i32>} : memref<1x8x64xf32, #tpu.memory_space<vmem>>, vector<1x8x64xf32>,
    return
  }
  func.func @transform_0(%arg0: i32) -> (i32, i32, i32) {
    %c0_i32 = arith.constant 0 : i32
    %c0_i32_0 = arith.constant 0 : i32
    %c0_i32_1 = arith.constant 0 : i32
    return %arg0, %c0_i32, %c0_i32_0 : i32, i32, i32
  }
  func.func @transform_1(%arg0: i32) -> (i32, i32) {
    %c0_i32 = arith.constant 0 : i32
    %c0_i32_0 = arith.constant 0 : i32
    %c0_i32_1 = arith.constant 0 : i32
    return %c0_i32, %c0_i32_0 : i32, i32
  }
  func.func @transform_2(%arg0: i32) -> (i32, i32) {
    %c0_i32 = arith.constant 0 : i32
    %c0_i32_0 = arith.constant 0 : i32
    %c0_i32_1 = arith.constant 0 : i32
    return %c0_i32, %c0_i32_0 : i32, i32
  }
  func.func @transform_3(%arg0: i32) -> (i32, i32, i32) {
    %c0_i32 = arith.constant 0 : i32
    %c0_i32_0 = arith.constant 0 : i32
    %c0_i32_1 = arith.constant 0 : i32
    return %arg0, %c0_i32, %c0_i32_0 : i32, i32, i32
  }
}

</mosaic_0001>

<bundles_post_ra>
// kernel: contracting_block_forward.3
= control target key start
LH: loop header
LB: loop body
LE: loop exit
PB: predicated region body
PF: predicated region fallthrough
CT: control target
= control target key end

     0   :  { %s708_s12 = smov 0   ;;  %s781_s0 = inlined_call_operand.vmem [shape: bf16[2,16,64], index: 0, kind: input, shape index: {}]   ;;  %s782_s1 = inlined_call_operand.vmem [shape: bf16[3,64,128], index: 1, kind: input, shape index: {}]   ;;  %s783_s2 = inlined_call_operand.vmem [shape: bf16[2,16,128], index: 2, kind: output, shape index: {0}]   ;;  %s784_s3 = inlined_call_operand.vmem [shape: f32[2,2,128], index: 3, kind: output, shape index: {1}]  }
   0x1 LB: > { %s549_s13 = sadd.s32 4294967295, %s684_s12   ;;  %p553_p0 = scmp.ge.s32.totalorder %s684_s12, 1  ;;  %s684_s12 = sphi %s708_s12, %s14_s12  }
   0x2   : > { %p140_p1 = scmp.lt.s32.totalorder %s684_s12, 3 }
   0x4   : > { %p141_p2 = pnand %p553_p0, %p140_p1 }
   0x5   : > { %v665_v0 = vld [vmem:[%s782_s1] sm:$0xff] (!%p141_p2)   ;;  %v686_v1 = vmov (!%p141_p2), 0.0   ;;  %v666_v2 = vld [vmem:[%s782_s1 + $0x8] sm:$0xff] (!%p141_p2)   ;;  %vm687_vm0 = vmmov (!%p141_p2), 0   ;;  %p168_p3 = scmp.lt.s32.totalorder (!%p141_p2), %s549_s13, 1  ;;  %v667_v4 = vld [vmem:[%s782_s1 + $0x10] sm:$0xff] (!%p141_p2)  }
   0x6   : > { %144 = sbr.rel (%p141_p2) target bundleno = 274 (0x112), region = 28  ;;  %619 = vmatprep.subr.bf16.mxu0 (!%p141_p2), %v686_v1  ;;  %631 = vmatprep.subr.bf16.mxu1 (!%p141_p2), %v686_v1  ;;  %v669_v3 = vld [vmem:[%s782_s1 + $0x40] sm:$0xff] (!%p141_p2)   ;;  %v671_v5 = vld [vmem:[%s782_s1 + $0x48] sm:$0xff] (!%p141_p2)   ;;  %v668_v6 = vld [vmem:[%s782_s1 + $0x18] sm:$0xff] (!%p141_p2)   ;;  %vm222_vm1 = vcmask (!%p141_p2), 523264   ;;  %vm352_vm2 = vcmask (!%p141_p2), 1040384  }
   0x7   : > { %620 = vmatpush3.bf16.msra.mxu0 (!%p141_p2), %v665_v0  ;;  %627 = vmatprep.mubr.msk.bf16.mxu0 (!%p141_p2), %vm687_vm0, %v686_v1  ;;  %v673_v7 = vld [vmem:[%s782_s1 + $0x50] sm:$0xff] (!%p141_p2)   ;;  %v672_v9 = vld [vmem:[%s782_s1 + $0x20] sm:$0xff] (!%p141_p2)   ;;  %v675_v10 = vld [vmem:[%s782_s1 + $0x58] sm:$0xff] (!%p141_p2)   ;;  %vm426_vm3 = vcmask (!%p141_p2), 1046528  }
   0x8   : > { %621 = vmatprep.subr.bf16.mxu0 (!%p141_p2), %v686_v1  ;;  %639 = vmatprep.mubr.msk.bf16.mxu1 (!%p141_p2), %vm687_vm0, %v686_v1  ;;  %v674_v11 = vld [vmem:[%s782_s1 + $0x28] sm:$0xff] (!%p141_p2)   ;;  %v676_v12 = vld [vmem:[%s782_s1 + $0x30] sm:$0xff] (!%p141_p2)   ;;  %v677_v13 = vld [vmem:[%s782_s1 + $0x38] sm:$0xff] (!%p141_p2)  }
   0x9   : > { %632 = vmatpush3.bf16.msra.mxu1 (!%p141_p2), %v669_v3 }
   0xa   : > { %633 = vmatprep.subr.bf16.mxu1 (!%p141_p2), %v686_v1 }
   0xb   : > { %622 = vmatpush3.bf16.msra.mxu0 (!%p141_p2), %v666_v2 }
   0xc   : > { %623 = vmatprep.subr.bf16.mxu0 (!%p141_p2), %v686_v1 }
   0xd   : > { %s786_s13 = smov (!%p168_p3, %s549_s13), 1  ;;  %634 = vmatpush3.bf16.msra.mxu1 %v671_v5 }
   0xe   : > { %s595_s22 = sshll.u32 %s786_s13, 3  ;;  %635 = vmatprep.subr.bf16.mxu1 %v686_v1  ;;  %s558_s20 = sshll.u32 %s786_s13, 1 }
   0xf   : > { %s172_s27 = scalar_lea.vmem %s781_s0, %s595_s22  ;;  %624 = vmatpush3.bf16.msra.mxu0 %v667_v4  ;;  %s177_s19 = scalar_lea.vmem %s783_s2, %s595_s22 }
  0x10   : > { %625 = vmatprep.subr.bf16.mxu0 %v686_v1  ;;  %v670_v8 = vld [vmem:[%s172_s27] sm:$0xff]   ;;  %s181_s23 = scalar_lea.vmem %s784_s3, %s558_s20 }
  0x11   : > { %636 = vmatpush3.bf16.msra.mxu1 %v673_v7 }
  0x12   : > { %637 = vmatprep.subr.bf16.mxu1 %v686_v1 }
  0x13   : > { %626 = vmatpush3.bf16.msra.mxu0 %v668_v6 }
  0x14   : > { %643 = vmatprep.subr.bf16.mxu0 %v686_v1 }
  0x15   : > { %638 = vmatpush3.bf16.msra.mxu1 %v675_v10 }
  0x16   : > { %628 = vmatmul.mubr.msk.bf16.vlgmr.msra.gmra.mrb[0].mxu0 %vm222_vm1, %v670_v8 }
  0x17   : > { %644 = vmatpush3.bf16.msra.mxu0 %v672_v9  ;;  %651 = vmatprep.mubr.msk.bf16.mxu0 %vm687_vm0, %v686_v1 }
  0x18   : > { %645 = vmatprep.subr.bf16.mxu0 %v686_v1  ;;  %640 = vmatmul.mubr.msk.bf16.vlgmr.msra.gmra.mrb[0].mxu1 %vm222_vm1, %v670_v8 }
  0x1b   : > { %646 = vmatpush3.bf16.msra.mxu0 %v674_v11 }
  0x1c   : > { %647 = vmatprep.subr.bf16.mxu0 %v686_v1 }
  0x1f   : > { %648 = vmatpush3.bf16.msra.mxu0 %v676_v12 }
  0x20   : > { %649 = vmatprep.subr.bf16.mxu0 %v686_v1 }
  0x23   : > { %650 = vmatpush3.bf16.msra.mxu0 %v677_v13 }
  0x26   : > { %652 = vmatmul.mubr.msk.bf16.vlgmr.msra.gmra.mrb[4].mxu0 %vm222_vm1, %v670_v8 }
  0xe9   : > { %v260_v14 = vpop.f32.mrb[0].mxu0 }
  0xea   : > { %v353_v15 = vrot.slane %v260_v14, 7  ;;  %v629_v16 = vpop.f32.mrb[1].mxu0 }
  0xeb   : > { %v263_v17 = vpop.f32.mrb[2].mxu0  ;;  %v343_v20 = vpop.f32.mrb[0].mxu1 }
  0xec   : > { %v354_v18 = vrot.slane %v263_v17, 7  ;;  %v630_v19 = vpop.f32.mrb[3].mxu0  ;;  %v427_v21 = vrot.slane %v343_v20, 1  ;;  %v641_v22 = vpop.f32.mrb[1].mxu1  ;;  %v358_v28 = vsel %vm352_vm2, 0.0, %v353_v15 }
  0xed   : > { %v346_v24 = vpop.f32.mrb[2].mxu1 }
  0xee   : > { %v355_v23 = vsel %vm352_vm2, %v353_v15, %v354_v18  ;;  %v428_v25 = vrot.slane %v346_v24, 1  ;;  %v642_v26 = vpop.f32.mrb[3].mxu1 }
  0xf0   : > { %v429_v27 = vsel %vm426_vm3, %v427_v21, %v428_v25  ;;  %v432_v36 = vsel %vm426_vm3, %v428_v25, 0.0 }
  0xf9   : > { %v417_v29 = vpop.f32.mrb[4].mxu0 }
  0xfa   : > { %v418_v30 = vadd.f32 %v417_v29, %v358_v28  ;;  %v653_v31 = vpop.f32.mrb[5].mxu0 }
  0xfb   : > { %v420_v32 = vpop.f32.mrb[6].mxu0 }
  0xfc   : > { %v433_v33 = vadd.f32 %v429_v27, %v418_v30  ;;  %v421_v34 = vadd.f32 %v420_v32, %v355_v23  ;;  %v654_v35 = vpop.f32.mrb[7].mxu0 }
  0xfe   : > { %v434_v37 = vadd.f32 %v432_v36, %v421_v34  ;;  %v452_v38 = vmul.f32 %v433_v33, %v433_v33 }
 0x100   : > { %v602_v39 = vpack.c.bf16 %v434_v37, %v433_v33  ;;  %v445_v40 = vadd.f32 %v434_v37, %v433_v33  ;;  %v453_v41 = vmul.f32 %v434_v37, %v434_v37 }
 0x102   : > { %603 = vst [vmem:[%s177_s19] sm:$0xff] %v602_v39   ;;  %v446_v42 = vrot.slane %v445_v40, 4  ;;  %v454_v43 = vadd.f32 %v453_v41, %v452_v38 }
 0x104   : > { %v447_v44 = vadd.f32 %v446_v42, %v445_v40  ;;  %v455_v45 = vrot.slane %v454_v43, 4 }
 0x106   : > { %v448_v46 = vrot.slane %v447_v44, 2  ;;  %v456_v47 = vadd.f32 %v455_v45, %v454_v43 }
 0x108   : > { %v449_v48 = vadd.f32 %v448_v46, %v447_v44  ;;  %v457_v49 = vrot.slane %v456_v47, 2 }
 0x10a   : > { %v450_v50 = vrot.slane %v449_v48, 1  ;;  %v458_v51 = vadd.f32 %v457_v49, %v456_v47 }
 0x10c   : > { %v459_v52 = vrot.slane %v458_v51, 1  ;;  %v451_v53 = vadd.f32 %v450_v50, %v449_v48 }
 0x10e   : > { %v460_v54 = vadd.f32 %v459_v52, %v458_v51 }
 0x110   : > { %v461_v55 = vsel %vm352_vm2, %v451_v53, %v460_v54 }
 0x111   : > { %462 = vst [vmem:[%s181_s23] sm:$0x3] %v461_v55 }
 0x112 PF: > { %s14_s12 = sadd.s32 1, %s684_s12  }
 0x113   : > { %p11_p4 = scmp.ge.s32.totalorder %s14_s12, 4  }
 0x115   :  { %13 = sbr.rel (!%p11_p4) target bundleno = 1 (0x1), region = 72 }

// kernel: tile.28
= control target key start
LH: loop header
LB: loop body
LE: loop exit
PB: predicated region body
PF: predicated region fallthrough
CT: control target
= control target key end

     0   :  { %s28_s0 = inlined_call_operand.vmem [shape: f32[8], index: 0, kind: input, shape index: {}]   ;;  %s29_s1 = inlined_call_operand.vmem [shape: f32[16,8], index: 1, kind: output, shape index: {}]  }
   0x1   :  { %v4_v0 = vld [vmem:[%s28_s0] ss:$0 sm:$0xff] }
   0x2   :  { %5 = vst [vmem:[%s29_s1] sm:$0xff] %v4_v0  ;;  %8 = vst [vmem:[%s29_s1 + $0x8] sm:$0xff] %v4_v0 }

// kernel: tile.29
= control target key start
LH: loop header
LB: loop body
LE: loop exit
PB: predicated region body
PF: predicated region fallthrough
CT: control target
= control target key end

     0   :  { %s131_s10 = smov 120   ;;  %s132_s11 = smov 104   ;;  %vm3_vm0 = vcmask 64512   ;;  %vm9_vm1 = vcmask 1048512   ;;  %vm15_vm2 = vcmask 982912   ;;  %vm21_vm3 = vcmask 917312   ;;  %s207_s0 = inlined_call_operand.vmem [shape: f32[16,8], index: 0, kind: input, shape index: {}]   ;;  %s208_s1 = inlined_call_operand.vmem [shape: f32[1,128], index: 1, kind: output, shape index: {}]  }
   0x1   :  { %v101_v0 = vld [vmem:[%s207_s0 + $0xf] sm:$0x1]   ;;  %v103_v1 = vld [vmem:[%s207_s0 + $0xd] sm:$0x1]   ;;  %v102_v2 = vld [vmem:[%s207_s0 + $0xe] sm:$0x1]  }
   0x2   :  { %7 = vrot.lane.b32.xlu0 %v101_v0, %s131_s10  ;;  %19 = vrot.lane.b32.xlu1 %v103_v1, %s132_s11  ;;  %v104_v3 = vld [vmem:[%s207_s0 + $0xc] sm:$0x1]   ;;  %s133_s16 = smov 112   ;;  %s134_s17 = smov 96   ;;  %v105_v4 = vld [vmem:[%s207_s0 + $0xb] sm:$0x1]  }
   0x3   :  { %v106_v5 = vld [vmem:[%s207_s0 + $0xa] sm:$0x1]   ;;  %v2_v6 = vld [vmem:[%s207_s0] sm:$0x1]   ;;  %s135_s24 = smov 88   ;;  %s136_s25 = smov 80  }
   0x4   :  { %4 = vst.msk [vmem:[#allocation0] sm:$0x1] %vm3_vm0, %v2_v6   ;;  %v107_v7 = vld [vmem:[%s207_s0 + $0x9] sm:$0x1]   ;;  %v108_v8 = vld [vmem:[%s207_s0 + $0x8] sm:$0x1]  }
   0x5   :  { %s137_s30 = smov 72   ;;  %s138_s2 = smov 64   ;;  %v109_v9 = vld [vmem:[%s207_s0 + $0x7] sm:$0x1]   ;;  %v110_v10 = vld [vmem:[%s207_s0 + $0x6] sm:$0x1]  }
   0x6   :  { %13 = vrot.lane.b32.xlu0 %v102_v2, %s133_s16  ;;  %25 = vrot.lane.b32.xlu1 %v104_v3, %s134_s17  ;;  %s139_s7 = smov 56   ;;  %s140_s8 = smov 48   ;;  %v111_v11 = vld [vmem:[%s207_s0 + $0x5] sm:$0x1]   ;;  %v112_v12 = vld [vmem:[%s207_s0 + $0x4] sm:$0x1]  }
   0x7   :  { %s141_s13 = smov 40   ;;  %s142_s14 = smov 32   ;;  %v113_v13 = vld [vmem:[%s207_s0 + $0x3] sm:$0x1]   ;;  %v114_v14 = vld [vmem:[%s207_s0 + $0x2] sm:$0x1]  }
   0x8   :  { %s143_s19 = smov 24   ;;  %s144_s20 = smov 16   ;;  %v115_v15 = vld [vmem:[%s207_s0 + $0x1] sm:$0x1]   ;;  %vm27_vm4 = vcmask 851712   ;;  %vm33_vm5 = vcmask 786112  }
   0x9   :  { %s145_s0 = smov 8   ;;  %vm39_vm6 = vcmask 720512   ;;  %vm45_vm7 = vcmask 654912   ;;  %vm51_vm8 = vcmask 589312   ;;  %vm57_vm9 = vcmask 523712  }
   0xa   :  { %31 = vrot.lane.b32.xlu0 %v105_v4, %s135_s24  ;;  %37 = vrot.lane.b32.xlu1 %v106_v5, %s136_s25  ;;  %vm63_vm10 = vcmask 458112   ;;  %vm69_vm11 = vcmask 392512   ;;  %vm75_vm12 = vcmask 326912   ;;  %vm81_vm13 = vcmask 261312  }
   0xb   :  { %vm87_vm14 = vcmask 195712   ;;  %vm93_vm15 = vcmask 130112  }
   0xe   :  { %43 = vrot.lane.b32.xlu0 %v107_v7, %s137_s30  ;;  %49 = vrot.lane.b32.xlu1 %v108_v8, %s138_s2 }
  0x12   :  { %55 = vrot.lane.b32.xlu0 %v109_v9, %s139_s7  ;;  %61 = vrot.lane.b32.xlu1 %v110_v10, %s140_s8 }
  0x16   :  { %67 = vrot.lane.b32.xlu0 %v111_v11, %s141_s13  ;;  %73 = vrot.lane.b32.xlu1 %v112_v12, %s142_s14 }
  0x1a   :  { %79 = vrot.lane.b32.xlu0 %v113_v13, %s143_s19  ;;  %85 = vrot.lane.b32.xlu1 %v114_v14, %s144_s20 }
  0x1e   :  { %91 = vrot.lane.b32.xlu0 %v115_v15, %s145_s0 }
  0x74   :  { %v8_v16 = vpop.permute.xlu0 %7   ;;  %v20_v17 = vpop.permute.xlu1 %19  }
  0x75   :  { %10 = vst.msk [vmem:[#allocation0] sm:$0x1] %vm9_vm1, %v8_v16  }
  0x78   :  { %v14_v18 = vpop.permute.xlu0 %13   ;;  %v26_v19 = vpop.permute.xlu1 %25  }
  0x79   :  { %16 = vst.msk [vmem:[#allocation0] sm:$0x1] %vm15_vm2, %v14_v18  }
  0x7a   :  { %22 = vst.msk [vmem:[#allocation0] sm:$0x1] %vm21_vm3, %v20_v17  }
  0x7b   :  { %28 = vst.msk [vmem:[#allocation0] sm:$0x1] %vm27_vm4, %v26_v19  }
  0x7c   :  { %v32_v20 = vpop.permute.xlu0 %31   ;;  %v38_v21 = vpop.permute.xlu1 %37  }
  0x7d   :  { %34 = vst.msk [vmem:[#allocation0] sm:$0x1] %vm33_vm5, %v32_v20  }
  0x7e   :  { %40 = vst.msk [vmem:[#allocation0] sm:$0x1] %vm39_vm6, %v38_v21  }
  0x80   :  { %v44_v22 = vpop.permute.xlu0 %43   ;;  %v50_v23 = vpop.permute.xlu1 %49  }
  0x81   :  { %46 = vst.msk [vmem:[#allocation0] sm:$0x1] %vm45_vm7, %v44_v22  }
  0x82   :  { %52 = vst.msk [vmem:[#allocation0] sm:$0x1] %vm51_vm8, %v50_v23  }
  0x84   :  { %v56_v24 = vpop.permute.xlu0 %55   ;;  %v62_v25 = vpop.permute.xlu1 %61  }
  0x85   :  { %58 = vst.msk [vmem:[#allocation0] sm:$0x1] %vm57_vm9, %v56_v24  }
  0x86   :  { %64 = vst.msk [vmem:[#allocation0] sm:$0x1] %vm63_vm10, %v62_v25  }
  0x88   :  { %v68_v26 = vpop.permute.xlu0 %67   ;;  %v74_v27 = vpop.permute.xlu1 %73  }
  0x89   :  { %70 = vst.msk [vmem:[#allocation0] sm:$0x1] %vm69_vm11, %v68_v26  }
  0x8a   :  { %76 = vst.msk [vmem:[#allocation0] sm:$0x1] %vm75_vm12, %v74_v27  }
  0x8c   :  { %v80_v28 = vpop.permute.xlu0 %79   ;;  %v86_v29 = vpop.permute.xlu1 %85  }
  0x8d   :  { %82 = vst.msk [vmem:[#allocation0] sm:$0x1] %vm81_vm13, %v80_v28  }
  0x8e   :  { %88 = vst.msk [vmem:[#allocation0] sm:$0x1] %vm87_vm14, %v86_v29  }
  0x90   :  { %v92_v30 = vpop.permute.xlu0 %91  }
  0x91   :  { %94 = vst.msk [vmem:[#allocation0] sm:$0x1] %vm93_vm15, %v92_v30  }
  0x98   :  { %v98_v31 = vld [vmem:[#allocation0] sm:$0x1] }
  0x99   :  { %100 = vst [vmem:[%s208_s1] sm:$0x1] %v98_v31 }

// kernel: contracting_block_forward.4
= control target key start
LH: loop header
LB: loop body
LE: loop exit
PB: predicated region body
PF: predicated region fallthrough
CT: control target
= control target key end

     0   :  { %s963_s18 = smov 0   ;;  %s1102_s0 = inlined_call_operand.vmem [shape: bf16[2,16,128], index: 0, kind: input, shape index: {}]   ;;  %s1103_s1 = inlined_call_operand.vmem [shape: f32[1,128], index: 1, kind: input, shape index: {}]   ;;  %s1104_s2 = inlined_call_operand.vmem [shape: f32[1,128], index: 2, kind: input, shape index: {}]   ;;  %s1105_s3 = inlined_call_operand.vmem [shape: bf16[3,128,128], index: 3, kind: input, shape index: {}]   ;;  %s1106_s4 = inlined_call_operand.vmem [shape: bf16[2,16,128], index: 4, kind: output, shape index: {0}]   ;;  %s1107_s5 = inlined_call_operand.vmem [shape: f32[2,2,128], index: 5, kind: output, shape index: {1}]  }
   0x1 LB: > { %s717_s19 = sadd.s32 4294967295, %s929_s18   ;;  %p721_p0 = scmp.ge.s32.totalorder %s929_s18, 1  ;;  %s929_s18 = sphi %s963_s18, %s16_s18  }
   0x2   : > { %p190_p1 = scmp.lt.s32.totalorder %s929_s18, 3 }
   0x4   : > { %p191_p2 = pnand %p721_p0, %p190_p1 }
   0x5   : > { %v899_v0 = vld [vmem:[%s1105_s3] sm:$0xff] (!%p191_p2)   ;;  %v931_v1 = vmov (!%p191_p2), 0.0   ;;  %v900_v2 = vld [vmem:[%s1105_s3 + $0x8] sm:$0xff] (!%p191_p2)   ;;  %vm932_vm0 = vmmov (!%p191_p2), 0   ;;  %p222_p3 = scmp.lt.s32.totalorder (!%p191_p2), %s717_s19, 1  ;;  %v901_v3 = vld [vmem:[%s1105_s3 + $0x10] sm:$0xff] (!%p191_p2)  }
   0x6   : > { %194 = sbr.rel (%p191_p2) target bundleno = 306 (0x132), region = 36  ;;  %829 = vmatprep.subr.bf16.mxu0 (!%p191_p2), %v931_v1  ;;  %849 = vmatprep.subr.bf16.mxu1 (!%p191_p2), %v931_v1  ;;  %v907_v4 = vld [vmem:[%s1105_s3 + $0x80] sm:$0xff] (!%p191_p2)   ;;  %v902_v5 = vld [vmem:[%s1105_s3 + $0x18] sm:$0xff] (!%p191_p2)   ;;  %v908_v10 = vld [vmem:[%s1105_s3 + $0x88] sm:$0xff] (!%p191_p2)   ;;  %vm496_vm3 = vcmask (!%p191_p2), 1040384   ;;  %vm594_vm4 = vcmask (!%p191_p2), 1046528  }
   0x7   : > { %830 = vmatpush3.bf16.msra.mxu0 (!%p191_p2), %v899_v0  ;;  %845 = vmatprep.mubr.msk.bf16.mxu0 (!%p191_p2), %vm932_vm0, %v931_v1  ;;  %v727_v7 = vld [vmem:[%s1103_s1] ss:$0 sm:$0xff] (!%p191_p2)  ;;  %v910_v15 = vld [vmem:[%s1105_s3 + $0x90] sm:$0xff] (!%p191_p2)   ;;  %v904_v17 = vld [vmem:[%s1105_s3 + $0x28] sm:$0xff] (!%p191_p2)  }
   0x8   : > { %831 = vmatprep.subr.bf16.mxu0 (!%p191_p2), %v931_v1  ;;  %865 = vmatprep.mubr.msk.bf16.mxu1 (!%p191_p2), %vm932_vm0, %v931_v1  ;;  %v903_v11 = vld [vmem:[%s1105_s3 + $0x20] sm:$0xff] (!%p191_p2)   ;;  %v912_v19 = vld [vmem:[%s1105_s3 + $0x98] sm:$0xff] (!%p191_p2)   ;;  %v905_v20 = vld [vmem:[%s1105_s3 + $0x30] sm:$0xff] (!%p191_p2)  }
   0x9   : > { %850 = vmatpush3.bf16.msra.mxu1 (!%p191_p2), %v907_v4  ;;  %v728_v14 = vld [vmem:[%s1104_s2] ss:$0 sm:$0xff] (!%p191_p2)  ;;  %v906_v24 = vld [vmem:[%s1105_s3 + $0x38] sm:$0xff] (!%p191_p2)   ;;  %v916_v27 = vld [vmem:[%s1105_s3 + $0xa8] sm:$0xff] (!%p191_p2)  }
   0xa   : > { %851 = vmatprep.subr.bf16.mxu1 (!%p191_p2), %v931_v1  ;;  %v914_v23 = vld [vmem:[%s1105_s3 + $0xa0] sm:$0xff] (!%p191_p2)   ;;  %v918_v30 = vld [vmem:[%s1105_s3 + $0xb0] sm:$0xff] (!%p191_p2)   ;;  %v911_v31 = vld [vmem:[%s1105_s3 + $0x48] sm:$0xff] (!%p191_p2)  }
   0xb   : > { %832 = vmatpush3.bf16.msra.mxu0 (!%p191_p2), %v900_v2  ;;  %v909_v29 = vld [vmem:[%s1105_s3 + $0x40] sm:$0xff] (!%p191_p2)   ;;  %v920_v32 = vld [vmem:[%s1105_s3 + $0xb8] sm:$0xff] (!%p191_p2)   ;;  %v913_v33 = vld [vmem:[%s1105_s3 + $0x50] sm:$0xff] (!%p191_p2)  }
   0xc   : > { %833 = vmatprep.subr.bf16.mxu0 (!%p191_p2), %v931_v1  ;;  %v915_v34 = vld [vmem:[%s1105_s3 + $0x58] sm:$0xff] (!%p191_p2)   ;;  %v917_v35 = vld [vmem:[%s1105_s3 + $0x60] sm:$0xff] (!%p191_p2)   ;;  %v919_v36 = vld [vmem:[%s1105_s3 + $0x68] sm:$0xff] (!%p191_p2)  }
   0xd   : > { %s1109_s19 = smov (!%p222_p3, %s717_s19), 1  ;;  %852 = vmatpush3.bf16.msra.mxu1 %v908_v10  ;;  %v921_v37 = vld [vmem:[%s1105_s3 + $0x70] sm:$0xff]   ;;  %v922_v38 = vld [vmem:[%s1105_s3 + $0x78] sm:$0xff]  }
   0xe   : > { %s789_s26 = sshll.u32 %s1109_s19, 3  ;;  %853 = vmatprep.subr.bf16.mxu1 %v931_v1  ;;  %s726_s10 = sshll.u32 %s1109_s19, 1 }
   0xf   : > { %s226_s29 = scalar_lea.vmem %s1102_s0, %s789_s26  ;;  %834 = vmatpush3.bf16.msra.mxu0 %v901_v3  ;;  %s231_s9 = scalar_lea.vmem %s1106_s4, %s789_s26 }
  0x10   : > { %v794_v6 = vld [vmem:[%s226_s29] sm:$0xff]   ;;  %835 = vmatprep.subr.bf16.mxu0 %v931_v1  ;;  %s235_s12 = scalar_lea.vmem %s1107_s5, %s726_s10 }
  0x11   : > { %v795_v8 = vunpack.c.l.bf16 %v794_v6  ;;  %v796_v9 = vunpack.c.h.bf16 %v794_v6  ;;  %854 = vmatpush3.bf16.msra.mxu1 %v910_v15 }
  0x12   : > { %855 = vmatprep.subr.bf16.mxu1 %v931_v1 }
  0x13   : > { %v248_v12 = vmul.f32 %v795_v8, %v727_v7  ;;  %v249_v13 = vmul.f32 %v796_v9, %v727_v7  ;;  %836 = vmatpush3.bf16.msra.mxu0 %v902_v5 }
  0x14   : > { %837 = vmatprep.subr.bf16.mxu0 %v931_v1 }
  0x15   : > { %v257_v16 = vadd.f32 %v728_v14, %v248_v12  ;;  %v258_v18 = vadd.f32 %v728_v14, %v249_v13  ;;  %856 = vmatpush3.bf16.msra.mxu1 %v912_v19 }
  0x16   : > { %857 = vmatprep.subr.bf16.mxu1 %v931_v1 }
  0x17   : > { %838 = vmatpush3.bf16.msra.mxu0 %v903_v11  ;;  %v261_v21 = vmul.f32 0.2, %v257_v16  ;;  %v262_v22 = vmul.f32 0.2, %v258_v18  ;;  %vm259_vm1 = vcmp.ge.f32.partialorder %v257_v16, 0.0  ;;  %vm260_vm2 = vcmp.ge.f32.partialorder %v258_v18, 0.0 }
  0x18   : > { %839 = vmatprep.subr.bf16.mxu0 %v931_v1 }
  0x19   : > { %v263_v25 = vsel %vm259_vm1, %v257_v16, %v261_v21  ;;  %v264_v26 = vsel %vm260_vm2, %v258_v18, %v262_v22  ;;  %858 = vmatpush3.bf16.msra.mxu1 %v914_v23 }
  0x1a   : > { %859 = vmatprep.subr.bf16.mxu1 %v931_v1  ;;  %v265_v28 = vpack.c.bf16 %v264_v26, %v263_v25 }
  0x1b   : > { %840 = vmatpush3.bf16.msra.mxu0 %v904_v17 }
  0x1c   : > { %841 = vmatprep.subr.bf16.mxu0 %v931_v1 }
  0x1d   : > { %860 = vmatpush3.bf16.msra.mxu1 %v916_v27 }
  0x1e   : > { %861 = vmatprep.subr.bf16.mxu1 %v931_v1 }
  0x1f   : > { %842 = vmatpush3.bf16.msra.mxu0 %v905_v20 }
  0x20   : > { %843 = vmatprep.subr.bf16.mxu0 %v931_v1 }
  0x21   : > { %862 = vmatpush3.bf16.msra.mxu1 %v918_v30 }
  0x22   : > { %863 = vmatprep.subr.bf16.mxu1 %v931_v1 }
  0x23   : > { %844 = vmatpush3.bf16.msra.mxu0 %v906_v24 }
  0x24   : > { %869 = vmatprep.subr.bf16.mxu0 %v931_v1 }
  0x25   : > { %864 = vmatpush3.bf16.msra.mxu1 %v920_v32 }
  0x26   : > { %846 = vmatmul.mubr.bf16.vlgmr.msra.gmra.mrb[0].mxu0 %v265_v28 }
  0x27   : > { %870 = vmatpush3.bf16.msra.mxu0 %v909_v29  ;;  %885 = vmatprep.mubr.msk.bf16.mxu0 %vm932_vm0, %v931_v1 }
  0x28   : > { %871 = vmatprep.subr.bf16.mxu0 %v931_v1  ;;  %866 = vmatmul.mubr.bf16.vlgmr.msra.gmra.mrb[0].mxu1 %v265_v28 }
  0x2b   : > { %872 = vmatpush3.bf16.msra.mxu0 %v911_v31 }
  0x2c   : > { %873 = vmatprep.subr.bf16.mxu0 %v931_v1 }
  0x2f   : > { %874 = vmatpush3.bf16.msra.mxu0 %v913_v33 }
  0x30   : > { %875 = vmatprep.subr.bf16.mxu0 %v931_v1 }
  0x33   : > { %876 = vmatpush3.bf16.msra.mxu0 %v915_v34 }
  0x34   : > { %877 = vmatprep.subr.bf16.mxu0 %v931_v1 }
  0x37   : > { %878 = vmatpush3.bf16.msra.mxu0 %v917_v35 }
  0x38   : > { %879 = vmatprep.subr.bf16.mxu0 %v931_v1 }
  0x3b   : > { %880 = vmatpush3.bf16.msra.mxu0 %v919_v36 }
  0x3c   : > { %881 = vmatprep.subr.bf16.mxu0 %v931_v1 }
  0x3f   : > { %882 = vmatpush3.bf16.msra.mxu0 %v921_v37 }
  0x40   : > { %883 = vmatprep.subr.bf16.mxu0 %v931_v1 }
  0x43   : > { %884 = vmatpush3.bf16.msra.mxu0 %v922_v38 }
  0x46   : > { %886 = vmatmul.mubr.bf16.vlgmr.msra.gmra.mrb[4].mxu0 %v265_v28 }
  0xf9   : > { %v364_v39 = vpop.f32.mrb[0].mxu0 }
  0xfa   : > { %v497_v40 = vrot.slane %v364_v39, 7  ;;  %v847_v41 = vpop.f32.mrb[1].mxu0 }
  0xfb   : > { %v367_v42 = vpop.f32.mrb[2].mxu0  ;;  %v487_v46 = vpop.f32.mrb[0].mxu1 }
  0xfc   : > { %v498_v43 = vrot.slane %v367_v42, 7  ;;  %v848_v44 = vpop.f32.mrb[3].mxu0  ;;  %v595_v47 = vrot.slane %v487_v46, 1  ;;  %v867_v48 = vpop.f32.mrb[1].mxu1  ;;  %v502_v53 = vsel %vm496_vm3, 0.0, %v497_v40 }
  0xfd   : > { %v490_v49 = vpop.f32.mrb[2].mxu1 }
  0xfe   : > { %v499_v45 = vsel %vm496_vm3, %v497_v40, %v498_v43  ;;  %v596_v50 = vrot.slane %v490_v49, 1  ;;  %v868_v51 = vpop.f32.mrb[3].mxu1 }
 0x100   : > { %v597_v52 = vsel %vm594_vm4, %v595_v47, %v596_v50  ;;  %v600_v61 = vsel %vm594_vm4, %v596_v50, 0.0 }
 0x119   : > { %v585_v54 = vpop.f32.mrb[4].mxu0 }
 0x11a   : > { %v586_v55 = vadd.f32 %v585_v54, %v502_v53  ;;  %v887_v56 = vpop.f32.mrb[5].mxu0 }
 0x11b   : > { %v588_v57 = vpop.f32.mrb[6].mxu0 }
 0x11c   : > { %v601_v58 = vadd.f32 %v597_v52, %v586_v55  ;;  %v589_v59 = vadd.f32 %v588_v57, %v499_v45  ;;  %v888_v60 = vpop.f32.mrb[7].mxu0 }
 0x11e   : > { %v602_v62 = vadd.f32 %v600_v61, %v589_v59  ;;  %v620_v63 = vmul.f32 %v601_v58, %v601_v58 }
 0x120   : > { %v800_v0 = vpack.c.bf16 %v602_v62, %v601_v58  ;;  %v613_v1 = vadd.f32 %v602_v62, %v601_v58  ;;  %v621_v2 = vmul.f32 %v602_v62, %v602_v62 }
 0x122   : > { %801 = vst [vmem:[%s231_s9] sm:$0xff] %v800_v0   ;;  %v614_v3 = vrot.slane %v613_v1, 4  ;;  %v622_v4 = vadd.f32 %v621_v2, %v620_v63 }
 0x124   : > { %v615_v5 = vadd.f32 %v614_v3, %v613_v1  ;;  %v623_v6 = vrot.slane %v622_v4, 4 }
 0x126   : > { %v616_v7 = vrot.slane %v615_v5, 2  ;;  %v624_v8 = vadd.f32 %v623_v6, %v622_v4 }
 0x128   : > { %v617_v9 = vadd.f32 %v616_v7, %v615_v5  ;;  %v625_v10 = vrot.slane %v624_v8, 2 }
 0x12a   : > { %v618_v11 = vrot.slane %v617_v9, 1  ;;  %v626_v12 = vadd.f32 %v625_v10, %v624_v8 }
 0x12c   : > { %v627_v13 = vrot.slane %v626_v12, 1  ;;  %v619_v14 = vadd.f32 %v618_v11, %v617_v9 }
 0x12e   : > { %v628_v15 = vadd.f32 %v627_v13, %v626_v12 }
 0x130   : > { %v629_v16 = vsel %vm496_vm3, %v619_v14, %v628_v15 }
 0x131   : > { %630 = vst [vmem:[%s235_s12] sm:$0x3] %v629_v16 }
 0x132 PF: > { %s16_s18 = sadd.s32 1, %s929_s18  }
 0x133   : > { %p13_p4 = scmp.ge.s32.totalorder %s16_s18, 4  }
 0x135   :  { %15 = sbr.rel (!%p13_p4) target bundleno = 1 (0x1), region = 80 }

// kernel: contracting_block_forward.5
= control target key start
LH: loop header
LB: loop body
LE: loop exit
PB: predicated region body
PF: predicated region fallthrough
CT: control target
= control target key end

     0   :  { %s535_s12 = smov 0   ;;  %s574_s0 = inlined_call_operand.vmem [shape: bf16[2,16,128], index: 0, kind: input, shape index: {}]   ;;  %s575_s1 = inlined_call_operand.vmem [shape: f32[1,128], index: 1, kind: input, shape index: {}]   ;;  %s576_s2 = inlined_call_operand.vmem [shape: f32[1,128], index: 2, kind: input, shape index: {}]   ;;  %s577_s3 = inlined_call_operand.vmem [shape: f32[2,8,64], index: 3, kind: output, shape index: {}]  }
   0x1 LB: > { %s458_s13 = sadd.s32 4294967295, %s505_s12   ;;  %p462_p0 = scmp.ge.s32.totalorder %s505_s12, 1  ;;  %s505_s12 = sphi %s535_s12, %s13_s12  }
   0x2   : > { %p137_p1 = scmp.lt.s32.totalorder %s505_s12, 3 }
   0x4   : > { %p138_p2 = pnand %p462_p0, %p137_p1 }
   0x5   : > { %p160_p3 = scmp.lt.s32.totalorder (!%p138_p2), %s458_s13, 1  ;;  %v507_v0 = vmov (!%p138_p2), 1983009808   ;;  %v203_v2 = vlaneseq (!%p138_p2)  ;;  %v466_v4 = vld [vmem:[%s575_s1] ss:$0 sm:$0xff] (!%p138_p2)  ;;  %s508_s22 = smov (!%p138_p2), 120  }
   0x6   : > { %141 = sbr.rel (%p138_p2) target bundleno = 295 (0x127), region = 32  ;;  %v201_v1 = vunpack.c.l.s4 (!%p138_p2), %v507_v0  ;;  %v467_v7 = vld [vmem:[%s576_s2] ss:$0 sm:$0xff] (!%p138_p2)  ;;  %vm353_vm2 = vcmask (!%p138_p2), 1041409   ;;  %vm355_vm3 = vcmask (!%p138_p2), 1042434   ;;  %vm357_vm4 = vcmask (!%p138_p2), 1043459  }
   0x7   : > { %v204_v9 = vshrl.u32 (!%p138_p2), %v203_v2, 7  ;;  %vm359_vm5 = vcmask (!%p138_p2), 1044484   ;;  %vm361_vm6 = vcmask (!%p138_p2), 1045509   ;;  %vm363_vm7 = vcmask (!%p138_p2), 1046534   ;;  %s509_s23 = smov (!%p138_p2), 112   ;;  %s510_s24 = smov (!%p138_p2), 96  }
   0x8   : > { %v202_v8 = vunpack.c.0.s8 (!%p138_p2), %v201_v1  ;;  %vm365_vm8 = vcmask (!%p138_p2), 1047559   ;;  %s511_s25 = smov (!%p138_p2), 104   ;;  %s512_s26 = smov (!%p138_p2), 80   ;;  %vm389_vm9 = vcmask (!%p138_p2), 64512   ;;  %vm391_vm10 = vcmask (!%p138_p2), 130048  }
   0x9   : > { %v323_v48 = vsub.s32 (!%p138_p2), 0, %v204_v9  ;;  %s513_s27 = smov (!%p138_p2), 88   ;;  %s514_s28 = smov (!%p138_p2), 72   ;;  %vm393_vm11 = vcmask (!%p138_p2), 195584   ;;  %vm395_vm12 = vcmask (!%p138_p2), 261120   ;;  %vm397_vm13 = vcmask (!%p138_p2), 326656  }
   0xa   : > { %v205_v14 = vsub.s32 (!%p138_p2), %v202_v8, %v204_v9  ;;  %vm399_vm14 = vcmask (!%p138_p2), 392192   ;;  %vm401_vm15 = vcmask (!%p138_p2), 457728  }
   0xd   : > { %s579_s13 = smov (!%p160_p3, %s458_s13), 1 }
   0xe   : > { %s478_s14 = sshll.u32 %s579_s13, 3 }
   0xf   : > { %s164_s17 = scalar_lea.vmem %s574_s0, %s478_s14  ;;  %s168_s4 = scalar_lea.vmem %s577_s3, %s478_s14 }
  0x10   : > { %v480_v3 = vld [vmem:[%s164_s17] sm:$0xff]  }
  0x11   : > { %v481_v5 = vunpack.c.l.bf16 %v480_v3  ;;  %v482_v6 = vunpack.c.h.bf16 %v480_v3 }
  0x13   : > { %v180_v10 = vmul.f32 %v481_v5, %v466_v4  ;;  %v181_v11 = vmul.f32 %v482_v6, %v466_v4 }
  0x15   : > { %v189_v12 = vadd.f32 %v467_v7, %v180_v10  ;;  %v190_v13 = vadd.f32 %v467_v7, %v181_v11 }
  0x17   : > { %vm191_vm0 = vcmp.ge.f32.partialorder %v189_v12, 0.0  ;;  %v193_v15 = vmul.f32 0.2, %v189_v12  ;;  %vm192_vm1 = vcmp.ge.f32.partialorder %v190_v13, 0.0  ;;  %v194_v16 = vmul.f32 0.2, %v190_v13 }
  0x19   : > { %v195_v17 = vsel %vm191_vm0, %v189_v12, %v193_v15  ;;  %v196_v18 = vsel %vm192_vm1, %v190_v13, %v194_v16  ;;  %vm403_vm0 = vcmask 523264  }
  0x1a   : > { %v206_v19 = vrot.slane %v195_v17, %v205_v14  ;;  %v199_v20 = vcombine.high %v195_v17, %v195_v17  ;;  %v223_v21 = vrot.slane %v196_v18, %v205_v14  ;;  %v216_v22 = vcombine.high %v196_v18, %v196_v18 }
  0x1c   : > { %v468_v23 = vrot.slane %v206_v19, 9  ;;  %v213_v24 = vrot.slane %v199_v20, %v205_v14  ;;  %v214_v25 = vcombine.high %v206_v19, %v206_v19  ;;  %v231_v26 = vcombine.high %v223_v21, %v223_v21 }
  0x1d   : > { %v230_v27 = vrot.slane %v216_v22, %v205_v14  ;;  %v472_v35 = vrot.slane %v223_v21, 9 }
  0x1e   : > { %v265_v28 = vmax.f32 %v206_v19, %v468_v23  ;;  %v470_v29 = vrot.slane %v213_v24, 9  ;;  %v469_v30 = vrot.slane %v214_v25, 9  ;;  %v473_v31 = vrot.slane %v231_v26, 9 }
  0x1f   : > { %v215_v32 = vcombine.high %v213_v24, %v213_v24  ;;  %v232_v38 = vcombine.high %v230_v27, %v230_v27  ;;  %v269_v39 = vmax.f32 %v223_v21, %v472_v35  ;;  %v474_v40 = vrot.slane %v230_v27, 9 }
  0x20   : > { %281 = vrot.lane.b32.xlu0 %v265_v28, %s508_s22  ;;  %v267_v33 = vmax.f32 %v213_v24, %v470_v29  ;;  %v266_v34 = vmax.f32 %v214_v25, %v469_v30  ;;  %v270_v36 = vmax.f32 %v231_v26, %v473_v31 }
  0x21   : > { %v471_v37 = vrot.slane %v215_v32, 9  ;;  %v475_v42 = vrot.slane %v232_v38, 9  ;;  %v271_v43 = vmax.f32 %v230_v27, %v474_v40 }
  0x22   : > { %285 = vrot.lane.b32.xlu1 %v267_v33, %s508_s22 }
  0x23   : > { %v268_v41 = vmax.f32 %v215_v32, %v471_v37  ;;  %v272_v44 = vmax.f32 %v232_v38, %v475_v42 }
  0x24   : > { %283 = vrot.lane.b32.xlu0 %v266_v34, %s508_s22 }
  0x26   : > { %291 = vrot.lane.b32.xlu1 %v270_v36, %s508_s22 }
  0x28   : > { %289 = vrot.lane.b32.xlu0 %v269_v39, %s508_s22 }
  0x2a   : > { %287 = vrot.lane.b32.xlu1 %v268_v41, %s508_s22 }
  0x2c   : > { %293 = vrot.lane.b32.xlu0 %v271_v43, %s508_s22 }
  0x2e   : > { %295 = vrot.lane.b32.xlu1 %v272_v44, %s508_s22 }
  0x92   : > { %v282_v45 = vpop.permute.xlu0 %281 }
  0x93   : > { %v305_v49 = vmax.f32 %v265_v28, %v282_v45 }
  0x94   : > { %v286_v46 = vpop.permute.xlu1 %285 }
  0x95   : > { %v307_v53 = vmax.f32 %v267_v33, %v286_v46  ;;  %v324_v55 = vrot.slane %v305_v49, %v323_v48 }
  0x96   : > { %v284_v47 = vpop.permute.xlu0 %283 }
  0x97   : > { %v306_v50 = vmax.f32 %v266_v34, %v284_v47  ;;  %v332_v61 = vrot.slane %v307_v53, %v323_v48 }
  0x98   : > { %v292_v51 = vpop.permute.xlu1 %291 }
  0x99   : > { %v328_v52 = vrot.slane %v306_v50, %v323_v48  ;;  %v310_v59 = vmax.f32 %v270_v36, %v292_v51 }
  0x9a   : > { %v290_v54 = vpop.permute.xlu0 %289 }
  0x9b   : > { %v309_v56 = vmax.f32 %v269_v39, %v290_v54  ;;  %v354_v58 = vsel %vm353_vm2, %v328_v52, %v324_v55  ;;  %v344_v4 = vrot.slane %v310_v59, %v323_v48 }
  0x9c   : > { %v288_v57 = vpop.permute.xlu1 %287  ;;  %v356_v2 = vsel %vm355_vm3, %v332_v61, %v354_v58 }
  0x9d   : > { %v308_v60 = vmax.f32 %v268_v41, %v288_v57  ;;  %v340_v1 = vrot.slane %v309_v56, %v323_v48 }
  0x9e   : > { %v294_v62 = vpop.permute.xlu0 %293 }
  0x9f   : > { %v336_v63 = vrot.slane %v308_v60, %v323_v48  ;;  %v311_v0 = vmax.f32 %v271_v43, %v294_v62 }
  0xa0   : > { %v296_v3 = vpop.permute.xlu1 %295 }
  0xa1   : > { %v358_v5 = vsel %vm357_vm4, %v336_v63, %v356_v2  ;;  %v348_v6 = vrot.slane %v311_v0, %v323_v48  ;;  %v312_v7 = vmax.f32 %v272_v44, %v296_v3 }
  0xa2   : > { %v360_v8 = vsel %vm359_vm5, %v340_v1, %v358_v5 }
  0xa3   : > { %v362_v9 = vsel %vm361_vm6, %v344_v4, %v360_v8  ;;  %v352_v10 = vrot.slane %v312_v7, %v323_v48 }
  0xa4   : > { %v364_v11 = vsel %vm363_vm7, %v348_v6, %v362_v9 }
  0xa5   : > { %v366_v12 = vsel %vm365_vm8, %v352_v10, %v364_v11 }
  0xa6   : > { %371 = vrot.lane.b32.xlu1 %v366_v12, %s509_s23  ;;  %368 = vrot.lane.b32.xlu0 %v366_v12, %s508_s22 }
  0xaa   : > { %377 = vrot.lane.b32.xlu1 %v366_v12, %s510_s24  ;;  %374 = vrot.lane.b32.xlu0 %v366_v12, %s511_s25 }
  0xae   : > { %383 = vrot.lane.b32.xlu1 %v366_v12, %s512_s26  ;;  %380 = vrot.lane.b32.xlu0 %v366_v12, %s513_s27 }
  0xb2   : > { %386 = vrot.lane.b32.xlu0 %v366_v12, %s514_s28 }
 0x118   : > { %v372_v13 = vpop.permute.xlu1 %371  ;;  %v369_v14 = vpop.permute.xlu0 %368 }
 0x119   : > { %v390_v15 = vsel %vm389_vm9, %v366_v12, %v369_v14 }
 0x11a   : > { %v392_v17 = vsel %vm391_vm10, %v390_v15, %v372_v13 }
 0x11c   : > { %v378_v16 = vpop.permute.xlu1 %377  ;;  %v375_v18 = vpop.permute.xlu0 %374 }
 0x11d   : > { %v394_v19 = vsel %vm393_vm11, %v392_v17, %v375_v18 }
 0x11e   : > { %v396_v20 = vsel %vm395_vm12, %v394_v19, %v378_v16 }
 0x120   : > { %v381_v21 = vpop.permute.xlu0 %380  ;;  %v384_v22 = vpop.permute.xlu1 %383 }
 0x121   : > { %v398_v23 = vsel %vm397_vm13, %v396_v20, %v381_v21 }
 0x122   : > { %v400_v24 = vsel %vm399_vm14, %v398_v23, %v384_v22 }
 0x124   : > { %v387_v25 = vpop.permute.xlu0 %386 }
 0x125   : > { %v402_v26 = vsel %vm401_vm15, %v400_v24, %v387_v25 }
 0x126   : > { %404 = vst.msk [vmem:[%s168_s4] sm:$0xff] %vm403_vm0, %v402_v26 }
 0x127 PF: > { %s13_s12 = sadd.s32 1, %s505_s12  }
 0x128   : > { %p10_p4 = scmp.ge.s32.totalorder %s13_s12, 4  }
 0x12a   :  { %12 = sbr.rel (!%p10_p4) target bundleno = 1 (0x1), region = 62 }

</bundles_post_ra>
